<compile_context>
chip_gen: v6e
topology: v6e:2x2x1
jax: 0.10.0
libtpu: 0.0.40
codegen_flags: <defaults>
</compile_context>

<pallas_src>
import functools

import jax
import jax.numpy as jnp
from jax.experimental import pallas as pl
from jax.experimental.pallas import tpu as pltpu


# ---------------------------------------------------------------------------
# Tiling helpers
# ---------------------------------------------------------------------------

_TARGET_BLOCK_BYTES = 4 * 1024 * 1024     # ~4 MiB per-step working set -> pipelining
_MIN_GRID_STEPS = 8                        # enough steps to pipeline / shard 2 TCs


def _vmem_budget_bytes():
    """Per-TensorCore VMEM budget with headroom, keyed off the actual chip."""
    kind = ""
    try:
        kind = jax.devices()[0].device_kind.lower()
    except Exception:
        pass
    cap = None
    try:
        cap = int(pltpu.get_tpu_info().vmem_capacity_bytes)
    except Exception:
        cap = None
    if cap is None or cap <= 0:
        # v5e / v6e have 128 MiB per TC; v7x has 64 MiB per TC.
        cap = 64 * 1024 * 1024 if "v7" in kind else 128 * 1024 * 1024
    if "v7" in kind:
        # Query may report per-chip; each TC only backs 64 MiB and both cores
        # double-buffer their own blocks once the parallel grid axis shards.
        cap = min(cap, 64 * 1024 * 1024)
    return max(24 * 1024 * 1024, (cap * 3) // 4)


def _vmem_limit(block_bytes, budget):
    """vmem_limit_bytes consistent with the chosen blocks (plus headroom)."""
    return int(min(budget, max(2 * int(block_bytes), 32 * 1024 * 1024)))


def _sublane_multiple(dtype):
    # f32 -> 8, bf16 -> 16, int8/fp8 -> 32 (sublane packing).
    return {4: 8, 2: 16, 1: 32}.get(jnp.dtype(dtype).itemsize, 8)


def _pick_c_tile(C, bytes_per_channel, budget, sub,
                 target_block_bytes=_TARGET_BLOCK_BYTES,
                 min_steps=_MIN_GRID_STEPS):
    """Channel tile: multiple of `sub` (or full C when C <= sub).

    Capped so (a) the per-step working set stays ~target_block_bytes (keeps
    BlockSpec double-buffering effective), (b) the grid has >= min_steps steps
    when C allows, and (c) small odd step counts are nudged even (v7x 2-TC
    balance). Returns None when even the minimum tile blows the VMEM budget.
    """
    bytes_per_channel = int(bytes_per_channel)
    if C <= sub:
        return C if C * bytes_per_channel <= budget else None
    if sub * bytes_per_channel > budget:
        return None
    by_budget = budget // bytes_per_channel
    by_target = max(target_block_bytes // bytes_per_channel, sub)
    by_steps = max(C // min_steps, sub)
    t = int(min(by_budget, by_target, by_steps, C))
    t = max((t // sub) * sub, sub)
    # Nudge small odd step counts toward even (per-step overhead ~0.35 us).
    while t > sub and (pl.cdiv(C, t) % 2 == 1) and pl.cdiv(C, t) < min_steps:
        t -= sub
    return int(t)


def _leaky(y, slope):
    if 0.0 <= slope <= 1.0:
        return jnp.maximum(y, y * slope)          # 1 VPU op / elem
    return jnp.where(y > 0.0, y, y * slope)


# ---------------------------------------------------------------------------
# Fused single-pass path: stats + normalize + leaky-relu per channel tile
# ---------------------------------------------------------------------------

def _fused_call(x3, w3, b3, *, eps, slope, c_tile, vmem_limit, alias_kwargs):
    N, C, HW = x3.shape
    inv_m = 1.0 / float(N * HW)
    unroll = True if N <= 8 else None
    itemsize = jnp.dtype(x3.dtype).itemsize

    def kernel(x_ref, w_ref, b_ref, o_ref):
        zero = jnp.zeros((c_tile, 1), jnp.float32)

        def stat_body(n, carry):
            s, ss = carry
            xn = x_ref[n].astype(jnp.float32)                   # (Ct, HW)
            # Lane-axis (XLU) reduce per sample; tiny per-n VALU accumulate.
            s = s + jnp.sum(xn, axis=1, keepdims=True)
            ss = ss + jnp.sum(xn * xn, axis=1, keepdims=True)
            return s, ss

        s, ss = jax.lax.fori_loop(0, N, stat_body, (zero, zero), unroll=unroll)

        mean = s * inv_m
        var = jnp.maximum(ss * inv_m - mean * mean, 0.0)        # clamp
        scale = jax.lax.rsqrt(var + eps) * w_ref[0].astype(jnp.float32)
        shift = b_ref[0].astype(jnp.float32) - mean * scale

        def norm_body(n, carry):
            xn = x_ref[n].astype(jnp.float32)
            y = xn * scale + shift                               # 2 VALU / elem
            o_ref[n] = _leaky(y, slope).astype(o_ref.dtype)
            return carry

        jax.lax.fori_loop(0, N, norm_body, 0, unroll=unroll)

    nc = pl.cdiv(C, c_tile)
    cost = pl.CostEstimate(
        flops=9 * N * C * HW,
        transcendentals=C,
        bytes_accessed=2 * N * C * HW * itemsize + 2 * C * 4,
    )
    return pl.pallas_call(
        kernel,
        out_shape=jax.ShapeDtypeStruct((N, C, HW), x3.dtype),
        grid=(nc,),
        in_specs=[
            pl.BlockSpec((N, c_tile, HW), lambda c: (0, c, 0)),
            pl.BlockSpec((1, c_tile, 1), lambda c: (0, c, 0)),
            pl.BlockSpec((1, c_tile, 1), lambda c: (0, c, 0)),
        ],
        out_specs=pl.BlockSpec((N, c_tile, HW), lambda c: (0, c, 0)),
        compiler_params=pltpu.CompilerParams(
            dimension_semantics=("parallel",),
            vmem_limit_bytes=int(vmem_limit),
        ),
        cost_estimate=cost,
        **alias_kwargs,
    )(x3, w3, b3)


# ---------------------------------------------------------------------------
# Two-pass fallback for very large N*H*W per channel
# ---------------------------------------------------------------------------

def _two_pass_call(x3, w3, b3, *, eps, slope, c_tile, hw_tile, vmem_limit,
                   alias_kwargs):
    N, C, HW = x3.shape
    inv_m = 1.0 / float(N * HW)
    nc = pl.cdiv(C, c_tile)
    nm = pl.cdiv(HW, hw_tile)
    need_mask = (HW % hw_tile) != 0
    itemsize = jnp.dtype(x3.dtype).itemsize

    # ---- pass 1: per-channel sum/sumsq -> folded (shift, scale) in (2, C, 1)
    def stats_kernel(x_ref, w_ref, b_ref, st_ref):
        m_i = pl.program_id(1)
        last = pl.num_programs(1) - 1

        @pl.when(m_i == 0)
        def _():
            st_ref[...] = jnp.zeros_like(st_ref)

        def accumulate(x):
            # Lane-axis (XLU) reduce first; tiny N reduce afterwards.
            st_ref[0] += jnp.sum(jnp.sum(x, axis=2, keepdims=True), axis=0)
            st_ref[1] += jnp.sum(jnp.sum(x * x, axis=2, keepdims=True), axis=0)

        if need_mask:
            @pl.when(m_i != last)
            def _():
                accumulate(x_ref[...].astype(jnp.float32))

            @pl.when(m_i == last)
            def _():
                x = x_ref[...].astype(jnp.float32)
                lane = jax.lax.broadcasted_iota(jnp.int32, x.shape, 2)
                x = jnp.where(m_i * hw_tile + lane < HW, x, 0.0)
                accumulate(x)
        else:
            accumulate(x_ref[...].astype(jnp.float32))

        @pl.when(m_i == last)
        def _():
            mean = st_ref[0] * inv_m
            var = jnp.maximum(st_ref[1] * inv_m - mean * mean, 0.0)
            scale = jax.lax.rsqrt(var + eps) * w_ref[0].astype(jnp.float32)
            shift = b_ref[0].astype(jnp.float32) - mean * scale
            st_ref[0] = shift
            st_ref[1] = scale

    stats_cost = pl.CostEstimate(
        flops=3 * N * C * HW,
        transcendentals=C,
        bytes_accessed=N * C * HW * itemsize + 4 * C * 4,
    )
    stats = pl.pallas_call(
        stats_kernel,
        out_shape=jax.ShapeDtypeStruct((2, C, 1), jnp.float32),
        grid=(nc, nm),
        in_specs=[
            pl.BlockSpec((N, c_tile, hw_tile), lambda c, m: (0, c, m)),
            pl.BlockSpec((1, c_tile, 1), lambda c, m: (0, c, 0)),
            pl.BlockSpec((1, c_tile, 1), lambda c, m: (0, c, 0)),
        ],
        out_specs=pl.BlockSpec((2, c_tile, 1), lambda c, m: (0, c, 0)),
        compiler_params=pltpu.CompilerParams(
            dimension_semantics=("parallel", "arbitrary"),
            vmem_limit_bytes=int(vmem_limit),
        ),
        cost_estimate=stats_cost,
    )(x3, w3, b3)

    # ---- pass 2: elementwise y = x*scale + shift, leaky-relu (no w/b DMAs)
    def norm_kernel(x_ref, st_ref, o_ref):
        x = x_ref[...].astype(jnp.float32)                       # (N, Ct, HWt)
        y = x * st_ref[1][None] + st_ref[0][None]
        o_ref[...] = _leaky(y, slope).astype(o_ref.dtype)

    norm_cost = pl.CostEstimate(
        flops=4 * N * C * HW,
        transcendentals=0,
        bytes_accessed=2 * N * C * HW * itemsize + 2 * C * 4,
    )
    return pl.pallas_call(
        norm_kernel,
        out_shape=jax.ShapeDtypeStruct((N, C, HW), x3.dtype),
        grid=(nc, nm),
        in_specs=[
            pl.BlockSpec((N, c_tile, hw_tile), lambda c, m: (0, c, m)),
            pl.BlockSpec((2, c_tile, 1), lambda c, m: (0, c, 0)),
        ],
        out_specs=pl.BlockSpec((N, c_tile, hw_tile), lambda c, m: (0, c, m)),
        compiler_params=pltpu.CompilerParams(
            dimension_semantics=("parallel", "parallel"),
            vmem_limit_bytes=int(vmem_limit),
        ),
        cost_estimate=norm_cost,
        **alias_kwargs,
    )(x3, stats)


# ---------------------------------------------------------------------------
# Public wrapper
# ---------------------------------------------------------------------------

@functools.partial(
    jax.jit,
    static_argnames=("eps", "slope", "force_two_pass", "c_tile", "hw_tile",
                     "in_place"),
)
def inplace_abn_forward(x_nchw, weight, bias, *, eps=1e-5, slope=0.01,
                        force_two_pass=False, c_tile=None, hw_tile=None,
                        in_place=False):
    """InPlaceABN forward (training mode) + LeakyReLU via Pallas TPU kernels.

    x_nchw: (N, C, H, W); weight, bias: (C,). Returns (N, C, H, W), x's dtype.
    """
    N, C, H, W = x_nchw.shape
    HW = H * W
    # NOTE: when H*W is small and not a multiple of 128 (7x7, 14x14 maps) the
    # lane axis pads to 128; padding HW at the XLA level would trade a copy for
    # lane-dense stores. Left as-is here.
    x3 = x_nchw.reshape(N, C, HW)             # free view of contiguous NCHW
    w3 = weight.astype(jnp.float32).reshape(1, C, 1)
    b3 = bias.astype(jnp.float32).reshape(1, C, 1)

    itemsize = jnp.dtype(x_nchw.dtype).itemsize
    sub = _sublane_multiple(x_nchw.dtype)
    budget = _vmem_budget_bytes()
    eps = float(eps)
    slope = float(slope)
    alias_kwargs = {"input_output_aliases": {0: 0}} if in_place else {}

    # Fused path working set per channel: in + out double-buffered (native
    # dtype) plus ~2 f32 per-sample temps (the kernel loops over N).
    bpc_fused = 4 * N * HW * itemsize + 8 * HW + 64

    use_fused = (not force_two_pass) and (hw_tile is None)
    ct = None
    if use_fused:
        ct = c_tile if c_tile is not None else _pick_c_tile(
            C, bpc_fused, budget, sub)
        if ct is None:
            use_fused = False

    if use_fused:
        vlim = _vmem_limit(ct * bpc_fused, budget)
        y3 = _fused_call(x3, w3, b3, eps=eps, slope=slope, c_tile=ct,
                         vmem_limit=vlim, alias_kwargs=alias_kwargs)
    else:
        # Two-pass: per channel, per lane working set (in+out 2-buf + f32 temps).
        bpe = (4 * itemsize + 8) * N
        min_ct = C if C <= sub else sub
        ht = hw_tile
        if ht is None:
            ht = min(HW, 2048)
            if HW > 128:
                ht = max(128, (ht // 128) * 128)
            # Shrink (multiples of 128) so at least `min_ct` channels fit VMEM.
            while ht > 128 and min_ct * bpe * ht > budget:
                ht = max(128, ((ht // 2) // 128) * 128)
        ct2 = c_tile if c_tile is not None else _pick_c_tile(
            C, bpe * ht, budget, sub)
        if ct2 is None:
            # TODO(synk): extreme N -> even (N, sub, 128) overshoots the budget;
            # an N grid axis (reduction in pass 1, parallel in pass 2) would fix.
            ct2 = min_ct
        vlim = _vmem_limit(ct2 * bpe * ht, budget)
        y3 = _two_pass_call(x3, w3, b3, eps=eps, slope=slope, c_tile=ct2,
                            hw_tile=ht, vmem_limit=vlim,
                            alias_kwargs=alias_kwargs)

    return y3.reshape(N, C, H, W)


# ---------------------------------------------------------------------------
# Reference + test
# ---------------------------------------------------------------------------

def _reference(x_nchw, weight, bias, eps=1e-5, slope=0.01):
    x = x_nchw.astype(jnp.float32)
    mean = jnp.mean(x, axis=(0, 2, 3), keepdims=True)
    var = jnp.mean(x * x, axis=(0, 2, 3), keepdims=True) - mean * mean
    y = (x - mean) * jax.lax.rsqrt(var + eps)
    y = y * weight.reshape(1, -1, 1, 1) + bias.reshape(1, -1, 1, 1)
    return jnp.where(y > 0, y, slope * y).astype(x_nchw.dtype)


if __name__ == "__main__":
    key = jax.random.PRNGKey(0)
    kx, kw, kb, kx2 = jax.random.split(key, 4)

    N, C, H, W = 2, 4, 16, 16
    x = jax.random.normal(kx, (N, C, H, W), dtype=jnp.float32)
    # deterministic synthetic BN affine parameters (shape (C,) as in __init__)
    weight = 1.0 + 0.1 * jax.random.normal(kw, (C,), dtype=jnp.float32)
    bias = 0.1 * jax.random.normal(kb, (C,), dtype=jnp.float32)

    y_ref = _reference(x, weight, bias)

    # Fused single-pass path (what moderate activation sizes take).
    y_fused = jax.block_until_ready(inplace_abn_forward(x, weight, bias))
    assert y_fused.shape == (N, C, H, W)
    assert jnp.max(jnp.abs(y_fused - y_ref)) < 2e-4, "fused path mismatch"

    # Two-pass fallback, forced with small HW tiles so the multi-step
    # reduction grid is exercised on this toy shape.
    y_two = jax.block_until_ready(
        inplace_abn_forward(x, weight, bias, force_two_pass=True, hw_tile=128))
    assert y_two.shape == (N, C, H, W)
    assert jnp.max(jnp.abs(y_two - y_ref)) < 2e-4, "two-pass path mismatch"

    # Two-pass fallback with a non-128-multiple HW (exercises the pl.when-
    # guarded tail mask on the last lane tile).
    C2, H2, W2 = 8, 15, 15
    x2 = jax.random.normal(kx2, (N, C2, H2, W2), dtype=jnp.float32)
    w2 = jnp.linspace(0.8, 1.2, C2, dtype=jnp.float32)
    b2 = jnp.linspace(-0.1, 0.1, C2, dtype=jnp.float32)
    y2_ref = _reference(x2, w2, b2)
    y2 = jax.block_until_ready(
        inplace_abn_forward(x2, w2, b2, force_two_pass=True))
    assert y2.shape == (N, C2, H2, W2)
    assert jnp.max(jnp.abs(y2 - y2_ref)) < 2e-4, "masked two-pass mismatch"

    print("KERNEL_OK")
</pallas_src>

<mosaic_0001>
module attributes {stable_mosaic.version = 11 : i64} {
  func.func @kernel(%arg0: i32, %arg1: memref<2x4x256xf32, #tpu.memory_space<vmem>>, %arg2: memref<1x4x1xf32, #tpu.memory_space<vmem>>, %arg3: memref<1x4x1xf32, #tpu.memory_space<vmem>>, %arg4: memref<2x4x256xf32, #tpu.memory_space<vmem>>) attributes {dimension_semantics = [#tpu.dimension_semantics<parallel>], iteration_bounds = array<i64: 1>, scalar_prefetch = 0 : i64, scratch_operands = 0 : i64, tpu.core_type = #tpu.core_type<tc>, window_params = [{transform_indices = @transform_0, window_bounds = array<i64: 2, 4, 256>}, {transform_indices = @transform_1, window_bounds = array<i64: 1, 4, 1>}, {transform_indices = @transform_2, window_bounds = array<i64: 1, 4, 1>}, {transform_indices = @transform_3, window_bounds = array<i64: 2, 4, 256>}]} {
    %cst = arith.constant 0.000000e+00 : f32
    %0 = vector.broadcast %cst : f32 to vector<4x1xf32>
    %c0_i32 = arith.constant 0 : i32
    %1 = arith.index_cast %c0_i32 : i32 to index
    %c0 = arith.constant 0 : index
    %c0_0 = arith.constant 0 : index
    %2 = vector.load %arg1[%1, %c0, %c0_0] : memref<2x4x256xf32, #tpu.memory_space<vmem>>, vector<1x4x256xf32>
    %3 = vector.shape_cast %2 : vector<1x4x256xf32> to vector<4x256xf32>
    %cst_1 = arith.constant dense<0.000000e+00> : vector<4xf32>
    %4 = vector.multi_reduction <add>, %3, %cst_1 [1] : vector<4x256xf32> to vector<4xf32>
    %5 = vector.shape_cast %4 : vector<4xf32> to vector<4x1xf32>
    %6 = arith.addf %0, %5 : vector<4x1xf32>
    %7 = arith.mulf %3, %3 : vector<4x256xf32>
    %cst_2 = arith.constant dense<0.000000e+00> : vector<4xf32>
    %8 = vector.multi_reduction <add>, %7, %cst_2 [1] : vector<4x256xf32> to vector<4xf32>
    %9 = vector.shape_cast %8 : vector<4xf32> to vector<4x1xf32>
    %10 = arith.addf %0, %9 : vector<4x1xf32>
    %c1_i32 = arith.constant 1 : i32
    %11 = arith.index_cast %c1_i32 : i32 to index
    %c0_3 = arith.constant 0 : index
    %c0_4 = arith.constant 0 : index
    %12 = vector.load %arg1[%11, %c0_3, %c0_4] : memref<2x4x256xf32, #tpu.memory_space<vmem>>, vector<1x4x256xf32>
    %13 = vector.shape_cast %12 : vector<1x4x256xf32> to vector<4x256xf32>
    %cst_5 = arith.constant dense<0.000000e+00> : vector<4xf32>
    %14 = vector.multi_reduction <add>, %13, %cst_5 [1] : vector<4x256xf32> to vector<4xf32>
    %15 = vector.shape_cast %14 : vector<4xf32> to vector<4x1xf32>
    %16 = arith.addf %6, %15 : vector<4x1xf32>
    %17 = arith.mulf %13, %13 : vector<4x256xf32>
    %cst_6 = arith.constant dense<0.000000e+00> : vector<4xf32>
    %18 = vector.multi_reduction <add>, %17, %cst_6 [1] : vector<4x256xf32> to vector<4xf32>
    %19 = vector.shape_cast %18 : vector<4xf32> to vector<4x1xf32>
    %20 = arith.addf %10, %19 : vector<4x1xf32>
    %c2_i32 = arith.constant 2 : i32
    %cst_7 = arith.constant 0.001953125 : f32
    %21 = vector.broadcast %cst_7 : f32 to vector<4x1xf32>
    %22 = arith.mulf %16, %21 : vector<4x1xf32>
    %cst_8 = arith.constant 0.001953125 : f32
    %23 = vector.broadcast %cst_8 : f32 to vector<4x1xf32>
    %24 = arith.mulf %20, %23 : vector<4x1xf32>
    %25 = arith.mulf %22, %22 : vector<4x1xf32>
    %26 = arith.subf %24, %25 : vector<4x1xf32>
    %cst_9 = arith.constant 0.000000e+00 : f32
    %27 = vector.broadcast %cst_9 : f32 to vector<4x1xf32>
    %28 = arith.maximumf %26, %27 : vector<4x1xf32>
    %cst_10 = arith.constant 9.99999974E-6 : f32
    %29 = vector.broadcast %cst_10 : f32 to vector<4x1xf32>
    %30 = arith.addf %28, %29 : vector<4x1xf32>
    %31 = math.rsqrt %30 : vector<4x1xf32>
    %c0_11 = arith.constant 0 : index
    %c0_12 = arith.constant 0 : index
    %c0_13 = arith.constant 0 : index
    %32 = vector.load %arg2[%c0_11, %c0_12, %c0_13] : memref<1x4x1xf32, #tpu.memory_space<vmem>>, vector<1x4x1xf32>
    %33 = vector.shape_cast %32 : vector<1x4x1xf32> to vector<4x1xf32>
    %34 = arith.mulf %31, %33 : vector<4x1xf32>
    %c0_14 = arith.constant 0 : index
    %c0_15 = arith.constant 0 : index
    %c0_16 = arith.constant 0 : index
    %35 = vector.load %arg3[%c0_14, %c0_15, %c0_16] : memref<1x4x1xf32, #tpu.memory_space<vmem>>, vector<1x4x1xf32>
    %36 = vector.shape_cast %35 : vector<1x4x1xf32> to vector<4x1xf32>
    %37 = arith.mulf %22, %34 : vector<4x1xf32>
    %38 = arith.subf %36, %37 : vector<4x1xf32>
    %c0_i32_17 = arith.constant 0 : i32
    %39 = arith.index_cast %c0_i32_17 : i32 to index
    %c0_18 = arith.constant 0 : index
    %c0_19 = arith.constant 0 : index
    %40 = vector.load %arg1[%39, %c0_18, %c0_19] : memref<2x4x256xf32, #tpu.memory_space<vmem>>, vector<1x4x256xf32>
    %41 = vector.shape_cast %40 : vector<1x4x256xf32> to vector<4x256xf32>
    %42 = vector.broadcast %34 : vector<4x1xf32> to vector<4x256xf32>
    %43 = arith.mulf %41, %42 : vector<4x256xf32>
    %44 = vector.broadcast %38 : vector<4x1xf32> to vector<4x256xf32>
    %45 = arith.addf %43, %44 : vector<4x256xf32>
    %cst_20 = arith.constant 0.00999999977 : f32
    %46 = vector.broadcast %cst_20 : f32 to vector<4x256xf32>
    %47 = arith.mulf %45, %46 : vector<4x256xf32>
    %48 = arith.maximumf %45, %47 : vector<4x256xf32>
    %49 = arith.index_cast %c0_i32_17 : i32 to index
    %c0_21 = arith.constant 0 : index
    %c0_22 = arith.constant 0 : index
    %50 = vector.load %arg4[%49, %c0_21, %c0_22] : memref<2x4x256xf32, #tpu.memory_space<vmem>>, vector<1x4x256xf32>
    %51 = vector.shape_cast %50 : vector<1x4x256xf32> to vector<4x256xf32>
    %52 = vector.shape_cast %48 : vector<4x256xf32> to vector<1x4x256xf32>
    tpu.vector_store %arg4[%49, %c0_21, %c0_22], %52 {strides = array<i32>} : memref<2x4x256xf32, #tpu.memory_space<vmem>>, vector<1x4x256xf32>,
    %c1_i32_23 = arith.constant 1 : i32
    %53 = arith.index_cast %c1_i32_23 : i32 to index
    %c0_24 = arith.constant 0 : index
    %c0_25 = arith.constant 0 : index
    %54 = vector.load %arg1[%53, %c0_24, %c0_25] : memref<2x4x256xf32, #tpu.memory_space<vmem>>, vector<1x4x256xf32>
    %55 = vector.shape_cast %54 : vector<1x4x256xf32> to vector<4x256xf32>
    %56 = vector.broadcast %34 : vector<4x1xf32> to vector<4x256xf32>
    %57 = arith.mulf %55, %56 : vector<4x256xf32>
    %58 = vector.broadcast %38 : vector<4x1xf32> to vector<4x256xf32>
    %59 = arith.addf %57, %58 : vector<4x256xf32>
    %cst_26 = arith.constant 0.00999999977 : f32
    %60 = vector.broadcast %cst_26 : f32 to vector<4x256xf32>
    %61 = arith.mulf %59, %60 : vector<4x256xf32>
    %62 = arith.maximumf %59, %61 : vector<4x256xf32>
    %63 = arith.index_cast %c1_i32_23 : i32 to index
    %c0_27 = arith.constant 0 : index
    %c0_28 = arith.constant 0 : index
    %64 = vector.load %arg4[%63, %c0_27, %c0_28] : memref<2x4x256xf32, #tpu.memory_space<vmem>>, vector<1x4x256xf32>
    %65 = vector.shape_cast %64 : vector<1x4x256xf32> to vector<4x256xf32>
    %66 = vector.shape_cast %62 : vector<4x256xf32> to vector<1x4x256xf32>
    tpu.vector_store %arg4[%63, %c0_27, %c0_28], %66 {strides = array<i32>} : memref<2x4x256xf32, #tpu.memory_space<vmem>>, vector<1x4x256xf32>,
    %c2_i32_29 = arith.constant 2 : i32
    return
  }
  func.func @transform_0(%arg0: i32) -> (i32, i32, i32) {
    %c0_i32 = arith.constant 0 : i32
    %c0_i32_0 = arith.constant 0 : i32
    %c0_i32_1 = arith.constant 0 : i32
    return %c0_i32, %arg0, %c0_i32_0 : i32, i32, i32
  }
  func.func @transform_1(%arg0: i32) -> (i32, i32, i32) {
    %c0_i32 = arith.constant 0 : i32
    %c0_i32_0 = arith.constant 0 : i32
    %c0_i32_1 = arith.constant 0 : i32
    return %c0_i32, %arg0, %c0_i32_0 : i32, i32, i32
  }
  func.func @transform_2(%arg0: i32) -> (i32, i32, i32) {
    %c0_i32 = arith.constant 0 : i32
    %c0_i32_0 = arith.constant 0 : i32
    %c0_i32_1 = arith.constant 0 : i32
    return %c0_i32, %arg0, %c0_i32_0 : i32, i32, i32
  }
  func.func @transform_3(%arg0: i32) -> (i32, i32, i32) {
    %c0_i32 = arith.constant 0 : i32
    %c0_i32_0 = arith.constant 0 : i32
    %c0_i32_1 = arith.constant 0 : i32
    return %c0_i32, %arg0, %c0_i32_0 : i32, i32, i32
  }
}

</mosaic_0001>

<bundles_post_ra>
// kernel: inplace_abn_forward.1
= control target key start
LH: loop header
LB: loop body
LE: loop exit
PB: predicated region body
PF: predicated region fallthrough
CT: control target
= control target key end

     0   :  { %vm18_vm0 = vcmask 1043456   ;;  %v119_v20 = vmov 0   ;;  %v120_v39 = vmov 839922192   ;;  %v75_v41 = vlaneseq  ;;  %s167_s0 = inlined_call_operand.vmem [shape: f32[2,4,256], index: 0, kind: input, shape index: {}]   ;;  %s168_s1 = inlined_call_operand.vmem [shape: f32[1,4,1], index: 1, kind: input, shape index: {}]   ;;  %s169_s2 = inlined_call_operand.vmem [shape: f32[1,4,1], index: 2, kind: input, shape index: {}]   ;;  %s170_s3 = inlined_call_operand.vmem [shape: f32[2,4,256], index: 3, kind: output, shape index: {}]  }
   0x1   :  { %v14_v0 = vld [vmem:[%s167_s0] sm:$0xff]  ;;  %v108_v1 = vld [vmem:[%s167_s0 + $0x8] sm:$0xff]  ;;  %113 = vset.pattern.permute.xlu0 %v119_v20  ;;  %114 = vset.pattern.permute.xlu1 %v119_v20  ;;  %v73_v40 = vunpack.c.l.s4 %v120_v39 }
   0x2   :  { %v16_v2 = vcombine.high %v14_v0, %v14_v0  ;;  %v19_v3 = vsel %vm18_vm0, %v14_v0, 0.0  ;;  %v25_v4 = vmul.f32 %v14_v0, %v14_v0  ;;  %v38_v5 = vcombine.high %v108_v1, %v108_v1  ;;  %v63_v33 = vld [vmem:[%s168_s1] sm:$0xf] }
   0x3   :  { %v40_v6 = vsel %vm18_vm0, %v108_v1, 0.0  ;;  %v46_v7 = vmul.f32 %v108_v1, %v108_v1  ;;  %v65_v36 = vld [vmem:[%s169_s2] sm:$0xf]  ;;  %v74_v42 = vunpack.c.0.s8 %v73_v40  ;;  %v76_v43 = vshrl.u32 %v75_v41, 7 }
   0x4   :  { %v20_v8 = vsel %vm18_vm0, %v16_v2, 0.0  ;;  %v27_v9 = vcombine.high %v25_v4, %v25_v4  ;;  %v29_v10 = vsel %vm18_vm0, %v25_v4, 0.0  ;;  %v41_v11 = vsel %vm18_vm0, %v38_v5, 0.0 }
   0x5   :  { %v21_v12 = vadd.f32 %v20_v8, %v19_v3  ;;  %v48_v13 = vcombine.high %v46_v7, %v46_v7  ;;  %v50_v15 = vsel %vm18_vm0, %v46_v7, 0.0  ;;  %v42_v17 = vadd.f32 %v41_v11, %v40_v6 }
   0x6   :  { %v30_v14 = vsel %vm18_vm0, %v27_v9, 0.0  ;;  %v77_v44 = vsub.s32 %v74_v42, %v76_v43 }
   0x7   :  { %22 = vadd.xlane.f32.xlu0 %v21_v12  ;;  %v31_v16 = vadd.f32 %v30_v14, %v29_v10  ;;  %v51_v18 = vsel %vm18_vm0, %v48_v13, 0.0 }
   0x8   :  { %v52_v19 = vadd.f32 %v51_v18, %v50_v15 }
   0x9   :  { %32 = vadd.xlane.f32.xlu1 %v31_v16 }
   0xb   :  { %43 = vadd.xlane.f32.xlu0 %v42_v17 }
   0xd   :  { %53 = vadd.xlane.f32.xlu1 %v52_v19 }
  0x90   :  { %v23_v21 = vpop.xlane.xlu0 %22 }
  0x92   :  { %v33_v22 = vpop.xlane.xlu1 %32 }
  0x94   :  { %v44_v23 = vpop.xlane.xlu0 %43 }
  0x95   :  { %v45_v24 = vadd.f32 %v44_v23, %v23_v21 }
  0x96   :  { %v54_v25 = vpop.xlane.xlu1 %53 }
  0x97   :  { %v56_v26 = vmul.f32 0.001953125, %v45_v24  ;;  %v55_v27 = vadd.f32 %v54_v25, %v33_v22 }
  0x99   :  { %v58_v28 = vmul.f32 %v56_v26, %v56_v26  ;;  %v57_v29 = vmul.f32 0.001953125, %v55_v27 }
  0x9b   :  { %v59_v30 = vsub.f32 %v57_v29, %v58_v28 }
  0x9d   :  { %v60_v31 = vmax.f32 %v59_v30, 0.0 }
  0x9f   :  { %v61_v32 = vadd.f32 1e-05, %v60_v31 }
  0xa1   :  { %117 = vrsqrt.f32 %v61_v32 }
  0xae   :  { %v118_v34 = vpop.eup %117 }
  0xaf   :  { %v64_v35 = vmul.f32 %v118_v34, %v63_v33 }
  0xb1   :  { %70 = vperm.xlu0 %113, %v64_v35   ;;  %v66_v37 = vmul.f32 %v64_v35, %v56_v26 }
  0xb3   :  { %v67_v38 = vsub.f32 %v65_v36, %v66_v37 }
  0xb5   :  { %83 = vperm.xlu1 %114, %v67_v38  }
 0x12c   :  { %v71_v45 = vpop.permute.xlu0 %70 }
 0x12d   :  { %v78_v46 = vrot.slane %v71_v45, %v77_v44 }
 0x12f   :  { %v80_v48 = vmul.f32 %v78_v46, %v14_v0  ;;  %v98_v49 = vmul.f32 %v108_v1, %v78_v46 }
 0x130   :  { %v84_v47 = vpop.permute.xlu1 %83 }
 0x131   :  { %v91_v50 = vrot.slane %v84_v47, %v77_v44 }
 0x133   :  { %v93_v51 = vadd.f32 %v91_v50, %v80_v48  ;;  %v99_v52 = vadd.f32 %v98_v49, %v91_v50 }
 0x135   :  { %v94_v53 = vmul.f32 0.01, %v93_v51  ;;  %v100_v54 = vmul.f32 0.01, %v99_v52 }
 0x137   :  { %v95_v55 = vmax.f32 %v93_v51, %v94_v53  ;;  %v101_v56 = vmax.f32 %v99_v52, %v100_v54 }
 0x139   :  { %96 = vst [vmem:[%s170_s3] sm:$0xff] %v95_v55  ;;  %110 = vst [vmem:[%s170_s3 + $0x8] sm:$0xff] %v101_v56 }

</bundles_post_ra>
